<compile_context>
chip_gen: v7x
topology: tpu7x:2x2x1
jax: 0.10.0
libtpu: 0.0.40
codegen_flags: <defaults>
</compile_context>

<pallas_src>
import jax
import jax.numpy as jnp
from jax import lax
from jax.experimental import pallas as pl
from jax.experimental.pallas import tpu as pltpu


def _leaky_relu(x, slope=0.1):
    return jnp.where(x > 0, x, slope * x)


def _head_kernel(x1_ref, x2_ref, w1_ref, b1_ref, w2a_ref, w2b_ref, b2_ref,
                 w3_ref, b3_ref, o_ref):
    # In-kernel bf16 cast (VPU; free filler under the DMA/MXU) — avoids a wrapper HBM pass.
    x1 = x1_ref[...].astype(jnp.bfloat16)
    x2 = x2_ref[...].astype(jnp.bfloat16)
    w1 = w1_ref[...]

    # Layer 1 twice against the same VMEM-resident W1 tile (strict bf16 MXU, f32 accumulate);
    # bias + LeakyReLU in f32.  dropout1 = identity at inference.
    h1 = _leaky_relu(jnp.dot(x1, w1, preferred_element_type=jnp.float32) + b1_ref[...])
    h2 = _leaky_relu(jnp.dot(x2, w1, preferred_element_type=jnp.float32) + b1_ref[...])

    # concat([|h1-h2|, h1+h2], -1) @ W2  ==  |h1-h2| @ W2[:H] + (h1+h2) @ W2[H:]
    # (difference formed in f32, then rounded to bf16 for the MXU).
    fa = jnp.abs(h1 - h2).astype(jnp.bfloat16)
    fb = (h1 + h2).astype(jnp.bfloat16)
    z = (jnp.dot(fa, w2a_ref[...], preferred_element_type=jnp.float32)
         + jnp.dot(fb, w2b_ref[...], preferred_element_type=jnp.float32)
         + b2_ref[...])
    z = _leaky_relu(z)                          # dropout2 = identity at inference

    # Final N=1 layer: contract the lane-dense W3 row [1, H2] with z [TB, H2] along H2 to
    # directly produce a lane-dense [1, TB] output row (no [TB,1] column, no transpose,
    # no masked partial stores).  b3 is a scalar read from SMEM.
    y = lax.dot_general(w3_ref[...], z, (((1,), (1,)), ((), ())),
                        preferred_element_type=jnp.float32)          # [1, TB]
    o_ref[...] = jnp.maximum(y + b3_ref[0, 0], 0.0)                   # ReLU


def _default_batch_tile(B, E, x_itemsize):
    """Largest multiple-of-128 divisor of B (<= 2048) whose double-buffered x1/x2 blocks
    fit a ~16 MiB budget (v7x-safe), preferring >= 2 grid steps (v7x has 2 TensorCores).
    Falls back to TB == B (single block), which is always layout-legal."""
    if B % 128 != 0 or B < 256:
        return B
    budget = 16 << 20
    cands = [t for t in range(128, min(B // 2, 2048) + 1, 128)
             if B % t == 0 and 2 * (2 * t * E * x_itemsize) <= budget]
    return max(cands) if cands else 128


def similarity_regressor(x1, x2, params, *, batch_tile=None):
    """x1, x2: [B, embed_size] pooled embeddings (f32 or bf16). Returns [B, 1] float32."""
    w1, b1, w2, b2, w3, b3 = params
    B, E = x1.shape
    H = w1.shape[1]
    H2 = w2.shape[1]
    assert x2.shape == (B, E)
    assert w2.shape[0] == 2 * H and w3.shape == (H2, 1)

    x_itemsize = x1.dtype.itemsize
    TB = _default_batch_tile(B, E, x_itemsize) if batch_tile is None else batch_tile
    assert B % TB == 0, "batch must be divisible by batch_tile"
    assert TB == B or TB % 128 == 0, (
        "batch_tile must equal the batch or be a multiple of 128 (lane-dense output rows)")
    G = B // TB

    # bf16 weights for the MXU (cast once; weights are small).  W2 is split to kill the
    # lane-wise concat; W3 is passed lane-dense as a [1, H2] f32 row.
    # NOTE: for real deployments H2 (= hidden_size // 2) should be a multiple of 128 (the
    # 768/256/128 config is); toy shapes run on lane-underfilled vregs and won't predict
    # production timings.
    w1_bf = w1.astype(jnp.bfloat16)
    w2a = w2[:H].astype(jnp.bfloat16)
    w2b = w2[H:].astype(jnp.bfloat16)
    w3t = w3.reshape(1, H2).astype(jnp.float32)
    b1f = b1.reshape(1, H).astype(jnp.float32)
    b2f = b2.reshape(1, H2).astype(jnp.float32)
    b3f = b3.reshape(1, 1).astype(jnp.float32)

    # True kernel HBM traffic: x1/x2 at their input dtype, bf16 weights, f32 biases, f32 out.
    weight_bytes = ((w1_bf.size + w2a.size + w2b.size) * 2
                    + (b1f.size + b2f.size + w3t.size + b3f.size) * 4)
    bytes_accessed = 2 * B * E * x_itemsize + weight_bytes + B * 4
    flops = 2 * (2 * B) * E * H + 2 * B * (2 * H) * H2 + 2 * B * H2

    # VMEM budget: double-buffered x1/x2 blocks + weights (constant index maps still get a
    # second pipeline buffer by default — pl.Buffered(1) would trim ~1-2 MiB but is omitted
    # for maximal lowering portability; the budget below already counts 2x) + headroom for
    # the f32 intermediates.  Explicit limit covers v5e's 16 MiB scoped default and stays
    # within v7x's 32 MiB scoped / 64 MiB physical VMEM.
    vmem_limit = min(32 << 20,
                     2 * (2 * TB * E * x_itemsize) + 2 * weight_bytes
                     + 2 * TB * 4 + (8 << 20))

    out_row = pl.pallas_call(
        _head_kernel,
        out_shape=jax.ShapeDtypeStruct((1, B), jnp.float32),
        grid_spec=pltpu.PrefetchScalarGridSpec(
            num_scalar_prefetch=0,
            grid=(G,),
            in_specs=[
                pl.BlockSpec((TB, E), lambda i: (i, 0)),            # x1 block (input dtype)
                pl.BlockSpec((TB, E), lambda i: (i, 0)),            # x2 block (input dtype)
                pl.BlockSpec((E, H), lambda i: (0, 0)),             # W1      (bf16)
                pl.BlockSpec((1, H), lambda i: (0, 0)),             # b1      (f32)
                pl.BlockSpec((H, H2), lambda i: (0, 0)),            # W2[:H]  (bf16)
                pl.BlockSpec((H, H2), lambda i: (0, 0)),            # W2[H:]  (bf16)
                pl.BlockSpec((1, H2), lambda i: (0, 0)),            # b2      (f32)
                pl.BlockSpec((1, H2), lambda i: (0, 0)),            # W3 row  (f32)
                pl.BlockSpec(memory_space=pltpu.MemorySpace.SMEM),  # b3 scalar (f32)
            ],
            out_specs=pl.BlockSpec((1, TB), lambda i: (0, i)),      # lane-dense output row
        ),
        compiler_params=pltpu.CompilerParams(
            dimension_semantics=("parallel",),
            vmem_limit_bytes=int(vmem_limit),
        ),
        cost_estimate=pl.CostEstimate(
            flops=int(flops), transcendentals=0, bytes_accessed=int(bytes_accessed)),
    )(x1, x2, w1_bf, b1f, w2a, w2b, b2f, w3t, b3f)

    return out_row.reshape(B, 1)


def init_params(key, embed_size, hidden_size):
    """Deterministic synthetic parameters matching nn.Linear shapes (stored as [in, out])."""
    k1, k2, k3, k4, k5, k6 = jax.random.split(key, 6)
    h2 = hidden_size // 2
    w1 = jax.random.normal(k1, (embed_size, hidden_size), jnp.float32) * 0.02
    b1 = jax.random.normal(k2, (1, hidden_size), jnp.float32) * 0.02
    w2 = jax.random.normal(k3, (2 * hidden_size, h2), jnp.float32) * 0.02
    b2 = jax.random.normal(k4, (1, h2), jnp.float32) * 0.02
    w3 = jax.random.normal(k5, (h2, 1), jnp.float32) * 0.02
    b3 = jax.random.normal(k6, (1, 1), jnp.float32) * 0.02
    return (w1, b1, w2, b2, w3, b3)


def reference(x1, x2, params):
    """Pure-JAX f32 reference matching the PyTorch module (eval mode)."""
    w1, b1, w2, b2, w3, b3 = params

    def common(x):
        h = x @ w1 + b1
        return jnp.where(h > 0, h, 0.1 * h)

    h1, h2 = common(x1), common(x2)
    f = jnp.concatenate([jnp.abs(h1 - h2), h1 + h2], axis=-1)
    z = f @ w2 + b2
    z = jnp.where(z > 0, z, 0.1 * z)
    y = z @ w3 + b3
    return jnp.maximum(y, 0.0)


if __name__ == "__main__":
    # Small shapes consistent with the module (embed_size=768, hidden_size=256 scaled down).
    # batch=256 with batch_tile=128 exercises a multi-step grid (grid=(2,)) with
    # double-buffered x DMA and lane-dense [1, 128] output rows.
    batch = 256
    embed_size = 128
    hidden_size = 64

    key = jax.random.PRNGKey(0)
    kx1, kx2, kp = jax.random.split(key, 3)
    x1 = jax.random.normal(kx1, (batch, embed_size), jnp.float32)
    x2 = jax.random.normal(kx2, (batch, embed_size), jnp.float32)
    params = init_params(kp, embed_size, hidden_size)

    out = similarity_regressor(x1, x2, params, batch_tile=128)
    out = jax.block_until_ready(out)

    ref = reference(x1, x2, params)
    assert out.shape == (batch, 1)
    # Tolerance loosened vs. a pure-f32 head: MXU operands are bf16 (documented deviation
    # from the f32 PyTorch module), accumulation and nonlinearities are f32.
    assert jnp.allclose(out, ref, atol=5e-3, rtol=5e-2), "mismatch vs JAX reference"

    print("KERNEL_OK")
</pallas_src>

<mosaic_0001>
module attributes {stable_mosaic.version = 11 : i64} {
  func.func @_head_kernel(%arg0: i32, %arg1: memref<128x128xf32, #tpu.memory_space<vmem>>, %arg2: memref<128x128xf32, #tpu.memory_space<vmem>>, %arg3: memref<128x64xbf16, #tpu.memory_space<vmem>>, %arg4: memref<1x64xf32, #tpu.memory_space<vmem>>, %arg5: memref<64x32xbf16, #tpu.memory_space<vmem>>, %arg6: memref<64x32xbf16, #tpu.memory_space<vmem>>, %arg7: memref<1x32xf32, #tpu.memory_space<vmem>>, %arg8: memref<1x32xf32, #tpu.memory_space<vmem>>, %arg9: memref<1x1xf32, #tpu.memory_space<smem>>, %arg10: memref<1x128xf32, #tpu.memory_space<vmem>>) attributes {dimension_semantics = [#tpu.dimension_semantics<parallel>], iteration_bounds = array<i64: 2>, scalar_prefetch = 0 : i64, scratch_operands = 0 : i64, tpu.core_type = #tpu.core_type<tc>, window_params = [{transform_indices = @transform_0, window_bounds = array<i64: 128, 128>}, {transform_indices = @transform_1, window_bounds = array<i64: 128, 128>}, {pipeline_mode = #tpu.pipeline_mode<synchronous>, transform_indices = @transform_2, window_bounds = array<i64: 128, 64>}, {pipeline_mode = #tpu.pipeline_mode<synchronous>, transform_indices = @transform_3, window_bounds = array<i64: 1, 64>}, {pipeline_mode = #tpu.pipeline_mode<synchronous>, transform_indices = @transform_4, window_bounds = array<i64: 64, 32>}, {pipeline_mode = #tpu.pipeline_mode<synchronous>, transform_indices = @transform_5, window_bounds = array<i64: 64, 32>}, {pipeline_mode = #tpu.pipeline_mode<synchronous>, transform_indices = @transform_6, window_bounds = array<i64: 1, 32>}, {pipeline_mode = #tpu.pipeline_mode<synchronous>, transform_indices = @transform_7, window_bounds = array<i64: 1, 32>}, {transform_indices = @transform_8, window_bounds = array<i64: 1, 1>}, {transform_indices = @transform_9, window_bounds = array<i64: 1, 128>}]} {
    %c0 = arith.constant 0 : index
    %c0_0 = arith.constant 0 : index
    %0 = vector.load %arg1[%c0, %c0_0] : memref<128x128xf32, #tpu.memory_space<vmem>>, vector<128x128xf32>
    %1 = arith.truncf %0 : vector<128x128xf32> to vector<128x128xbf16>
    %c0_1 = arith.constant 0 : index
    %c0_2 = arith.constant 0 : index
    %2 = vector.load %arg2[%c0_1, %c0_2] : memref<128x128xf32, #tpu.memory_space<vmem>>, vector<128x128xf32>
    %3 = arith.truncf %2 : vector<128x128xf32> to vector<128x128xbf16>
    %c0_3 = arith.constant 0 : index
    %c0_4 = arith.constant 0 : index
    %4 = vector.load %arg3[%c0_3, %c0_4] : memref<128x64xbf16, #tpu.memory_space<vmem>>, vector<128x64xbf16>
    %cst = arith.constant dense<0.000000e+00> : vector<128x64xf32>
    %5 = tpu.matmul %1, %4, %cst {dimension_numbers = #tpu.dot_dimension_numbers<[1], [0], [0], [1], [0, 0, 1, 1], [], []>} : vector<128x128xbf16>, vector<128x64xbf16>, vector<128x64xf32> -> vector<128x64xf32>
    %c0_5 = arith.constant 0 : index
    %c0_6 = arith.constant 0 : index
    %6 = vector.load %arg4[%c0_5, %c0_6] : memref<1x64xf32, #tpu.memory_space<vmem>>, vector<1x64xf32>
    %7 = vector.broadcast %6 : vector<1x64xf32> to vector<128x64xf32>
    %8 = arith.addf %5, %7 : vector<128x64xf32>
    %cst_7 = arith.constant 0.000000e+00 : f32
    %9 = vector.broadcast %cst_7 : f32 to vector<128x64xf32>
    %10 = arith.cmpf ogt, %8, %9 : vector<128x64xf32>
    %cst_8 = arith.constant 1.000000e-01 : f32
    %11 = vector.broadcast %cst_8 : f32 to vector<128x64xf32>
    %12 = arith.mulf %11, %8 : vector<128x64xf32>
    %13 = arith.select %10, %8, %12 : vector<128x64xi1>, vector<128x64xf32>
    %cst_9 = arith.constant dense<0.000000e+00> : vector<128x64xf32>
    %14 = tpu.matmul %3, %4, %cst_9 {dimension_numbers = #tpu.dot_dimension_numbers<[1], [0], [0], [1], [0, 0, 1, 1], [], []>} : vector<128x128xbf16>, vector<128x64xbf16>, vector<128x64xf32> -> vector<128x64xf32>
    %c0_10 = arith.constant 0 : index
    %c0_11 = arith.constant 0 : index
    %15 = vector.load %arg4[%c0_10, %c0_11] : memref<1x64xf32, #tpu.memory_space<vmem>>, vector<1x64xf32>
    %16 = vector.broadcast %15 : vector<1x64xf32> to vector<128x64xf32>
    %17 = arith.addf %14, %16 : vector<128x64xf32>
    %cst_12 = arith.constant 0.000000e+00 : f32
    %18 = vector.broadcast %cst_12 : f32 to vector<128x64xf32>
    %19 = arith.cmpf ogt, %17, %18 : vector<128x64xf32>
    %cst_13 = arith.constant 1.000000e-01 : f32
    %20 = vector.broadcast %cst_13 : f32 to vector<128x64xf32>
    %21 = arith.mulf %20, %17 : vector<128x64xf32>
    %22 = arith.select %19, %17, %21 : vector<128x64xi1>, vector<128x64xf32>
    %23 = arith.subf %13, %22 : vector<128x64xf32>
    %24 = math.absf %23 : vector<128x64xf32>
    %25 = arith.truncf %24 : vector<128x64xf32> to vector<128x64xbf16>
    %26 = arith.addf %13, %22 : vector<128x64xf32>
    %27 = arith.truncf %26 : vector<128x64xf32> to vector<128x64xbf16>
    %c0_14 = arith.constant 0 : index
    %c0_15 = arith.constant 0 : index
    %28 = vector.load %arg5[%c0_14, %c0_15] : memref<64x32xbf16, #tpu.memory_space<vmem>>, vector<64x32xbf16>
    %cst_16 = arith.constant dense<0.000000e+00> : vector<128x32xf32>
    %29 = tpu.matmul %25, %28, %cst_16 {dimension_numbers = #tpu.dot_dimension_numbers<[1], [0], [0], [1], [0, 0, 1, 1], [], []>} : vector<128x64xbf16>, vector<64x32xbf16>, vector<128x32xf32> -> vector<128x32xf32>
    %c0_17 = arith.constant 0 : index
    %c0_18 = arith.constant 0 : index
    %30 = vector.load %arg6[%c0_17, %c0_18] : memref<64x32xbf16, #tpu.memory_space<vmem>>, vector<64x32xbf16>
    %cst_19 = arith.constant dense<0.000000e+00> : vector<128x32xf32>
    %31 = tpu.matmul %27, %30, %cst_19 {dimension_numbers = #tpu.dot_dimension_numbers<[1], [0], [0], [1], [0, 0, 1, 1], [], []>} : vector<128x64xbf16>, vector<64x32xbf16>, vector<128x32xf32> -> vector<128x32xf32>
    %32 = arith.addf %29, %31 : vector<128x32xf32>
    %c0_20 = arith.constant 0 : index
    %c0_21 = arith.constant 0 : index
    %33 = vector.load %arg7[%c0_20, %c0_21] : memref<1x32xf32, #tpu.memory_space<vmem>>, vector<1x32xf32>
    %34 = vector.broadcast %33 : vector<1x32xf32> to vector<128x32xf32>
    %35 = arith.addf %32, %34 : vector<128x32xf32>
    %cst_22 = arith.constant 0.000000e+00 : f32
    %36 = vector.broadcast %cst_22 : f32 to vector<128x32xf32>
    %37 = arith.cmpf ogt, %35, %36 : vector<128x32xf32>
    %cst_23 = arith.constant 1.000000e-01 : f32
    %38 = vector.broadcast %cst_23 : f32 to vector<128x32xf32>
    %39 = arith.mulf %38, %35 : vector<128x32xf32>
    %40 = arith.select %37, %35, %39 : vector<128x32xi1>, vector<128x32xf32>
    %c0_24 = arith.constant 0 : index
    %c0_25 = arith.constant 0 : index
    %41 = vector.load %arg8[%c0_24, %c0_25] : memref<1x32xf32, #tpu.memory_space<vmem>>, vector<1x32xf32>
    %cst_26 = arith.constant dense<0.000000e+00> : vector<1x128xf32>
    %42 = tpu.matmul %41, %40, %cst_26 {dimension_numbers = #tpu.dot_dimension_numbers<[1], [1], [0], [0], [0, 0, 1, 0], [], []>} : vector<1x32xf32>, vector<128x32xf32>, vector<1x128xf32> -> vector<1x128xf32>
    %c0_27 = arith.constant 0 : index
    %c0_28 = arith.constant 0 : index
    %43 = memref.load %arg9[%c0_27, %c0_28] : memref<1x1xf32, #tpu.memory_space<smem>>
    %44 = vector.broadcast %43 : f32 to vector<1x128xf32>
    %45 = arith.addf %42, %44 : vector<1x128xf32>
    %cst_29 = arith.constant 0.000000e+00 : f32
    %46 = vector.broadcast %cst_29 : f32 to vector<1x128xf32>
    %47 = arith.maximumf %45, %46 : vector<1x128xf32>
    %c0_30 = arith.constant 0 : index
    %c0_31 = arith.constant 0 : index
    %48 = vector.load %arg10[%c0_30, %c0_31] : memref<1x128xf32, #tpu.memory_space<vmem>>, vector<1x128xf32>
    tpu.vector_store %arg10[%c0_30, %c0_31], %47 {strides = array<i32>} : memref<1x128xf32, #tpu.memory_space<vmem>>, vector<1x128xf32>,
    return
  }
  func.func @transform_0(%arg0: i32) -> (i32, i32) {
    %c0_i32 = arith.constant 0 : i32
    %c0_i32_0 = arith.constant 0 : i32
    return %arg0, %c0_i32 : i32, i32
  }
  func.func @transform_1(%arg0: i32) -> (i32, i32) {
    %c0_i32 = arith.constant 0 : i32
    %c0_i32_0 = arith.constant 0 : i32
    return %arg0, %c0_i32 : i32, i32
  }
  func.func @transform_2(%arg0: i32) -> (i32, i32) {
    %c0_i32 = arith.constant 0 : i32
    %c0_i32_0 = arith.constant 0 : i32
    %c0_i32_1 = arith.constant 0 : i32
    return %c0_i32, %c0_i32_0 : i32, i32
  }
  func.func @transform_3(%arg0: i32) -> (i32, i32) {
    %c0_i32 = arith.constant 0 : i32
    %c0_i32_0 = arith.constant 0 : i32
    %c0_i32_1 = arith.constant 0 : i32
    return %c0_i32, %c0_i32_0 : i32, i32
  }
  func.func @transform_4(%arg0: i32) -> (i32, i32) {
    %c0_i32 = arith.constant 0 : i32
    %c0_i32_0 = arith.constant 0 : i32
    %c0_i32_1 = arith.constant 0 : i32
    return %c0_i32, %c0_i32_0 : i32, i32
  }
  func.func @transform_5(%arg0: i32) -> (i32, i32) {
    %c0_i32 = arith.constant 0 : i32
    %c0_i32_0 = arith.constant 0 : i32
    %c0_i32_1 = arith.constant 0 : i32
    return %c0_i32, %c0_i32_0 : i32, i32
  }
  func.func @transform_6(%arg0: i32) -> (i32, i32) {
    %c0_i32 = arith.constant 0 : i32
    %c0_i32_0 = arith.constant 0 : i32
    %c0_i32_1 = arith.constant 0 : i32
    return %c0_i32, %c0_i32_0 : i32, i32
  }
  func.func @transform_7(%arg0: i32) -> (i32, i32) {
    %c0_i32 = arith.constant 0 : i32
    %c0_i32_0 = arith.constant 0 : i32
    %c0_i32_1 = arith.constant 0 : i32
    return %c0_i32, %c0_i32_0 : i32, i32
  }
  func.func @transform_8(%arg0: i32) -> (i32, i32) {
    %c0_i32 = arith.constant 0 : i32
    %c0_i32_0 = arith.constant 0 : i32
    %c0_i32_1 = arith.constant 0 : i32
    return %c0_i32, %c0_i32_0 : i32, i32
  }
  func.func @transform_9(%arg0: i32) -> (i32, i32) {
    %c0_i32 = arith.constant 0 : i32
    %c0_i32_0 = arith.constant 0 : i32
    return %c0_i32, %arg0 : i32, i32
  }
}

</mosaic_0001>

<bundles_post_ra>
// kernel: tpu_custom_call.1
= control target key start
LH: loop header
LB: loop body
LE: loop exit
PB: predicated region body
PF: predicated region fallthrough
CT: control target
= control target key end

     0   :  { %s2553_s0 = inlined_call_operand.hbm [shape: f32[256,128], index: 0, kind: input, shape index: {}]   ;;  %s2554_s1 = inlined_call_operand.hbm [shape: f32[256,128], index: 1, kind: input, shape index: {}]   ;;  %s2555_s2 = inlined_call_operand.vmem [shape: bf16[128,64], index: 2, kind: input, shape index: {}]   ;;  %s2556_s3 = inlined_call_operand.vmem [shape: f32[1,64], index: 3, kind: input, shape index: {}]   ;;  %s2557_s4 = inlined_call_operand.vmem [shape: bf16[64,32], index: 4, kind: input, shape index: {}]   ;;  %s2558_s5 = inlined_call_operand.vmem [shape: bf16[64,32], index: 5, kind: input, shape index: {}]   ;;  %s2559_s6 = inlined_call_operand.vmem [shape: f32[1,32], index: 6, kind: input, shape index: {}]   ;;  %s2560_s7 = inlined_call_operand.vmem [shape: f32[1,32], index: 7, kind: input, shape index: {}]   ;;  %s2561_s8 = inlined_call_operand.<no memory space> [shape: f32[1,1], index: 8, kind: input, shape index: {}]   ;;  %s2562_s9 = inlined_call_operand.hbm [shape: f32[1,256], index: 9, kind: output, shape index: {}]  }
   0x1   :  { %2569 = sst [smem:[#allocation14_spill]] %s2553_s0 }
   0x2   :  { %14 = sst [smem:[#allocation2]] %s2561_s8 }
   0x3   :  { %15 = vsyncpa [#allocation4], 0 }
   0x4   :  { %17 = vsyncpa [#allocation4 + $0x1], 0 }
   0x5   :  { %18 = vsyncpa [#allocation7], 0 }
   0x6   :  { %20 = vsyncpa [#allocation7 + $0x1], 0 }
   0x7   :  { %21 = vsyncpa [#allocation5], 0 }
   0x8   :  { %23 = vsyncpa [#allocation5 + $0x1], 0  ;;  %s2075_s11 = smov 0   ;;  %s2077_s12 = smov 0  }
   0x9   :  { %s2079_s13 = smov 0   ;;  %s2081_s14 = smov 0  }
   0xa LB: > { %2570 = sst [smem:[#allocation12_spill]] %s2008_s13  ;;  %s2096_s8 = sadd.s32 4294967295, %s2012_s14   ;;  %s2012_s14 = sphi %s2081_s14, %s2592_s14   ;;  %s2008_s13 = sphi %s2079_s13, %s2589_s13   ;;  %s2004_s12 = sphi %s2077_s12, %s2591_s12   ;;  %s2000_s11 = sphi %s2075_s11, %s2590_s11  }
   0xb   : > { %s1474_s15 = sadd.s32 4294967294, %s2012_s14   ;;  %s2100_s16 = sadd.s32 1, %s2012_s14  }
   0xc   : > { %s36_s17 = sadd.s32 1, %s2008_s13  ;;  %s33_s18 = ssub.s32 %s2012_s14, %s2100_s16 }
   0xd   : > { %p43_p0 = scmp.ne.s32.totalorder %s2008_s13, %s2004_s12  ;;  %p34_p1 = scmp.eq.s32.totalorder %s33_s18, 0 }
   0xe   : > { %p44_p2 = scmp.eq.s32.totalorder %s2012_s14, 0  ;;  %p49_p3 = scmp.ne.s32.totalorder %s2004_s12, %s2000_s11 }
   0xf   : > { %p50_p4 = scmp.eq.s32.totalorder %s2096_s8, 0  ;;  %p246_p7 = scmp.eq.s32.totalorder %s2096_s8, 1 }
  0x10   : > { %s2112_s19 = scalar_select %p34_p1, %s2008_s13, %s36_s17  }
  0x11   : > { %p2114_p5 = por %p44_p2, %p43_p0  ;;  %p2118_p6 = por %p50_p4, %p49_p3 }
  0x12   : > { %2571 = sst [smem:[#allocation13_spill]] %s2112_s19  ;;  %p252_p8 = scmp.eq.s32.totalorder %s1474_s15, 1 }
  0x13   : > { %s2573_s21 = scalar_select %p2118_p6, 1, 0 }
  0x14   : > { %p1827_p10 = scmp.lt.s32.totalorder %s2012_s14, 2  ;;  %p2125_p11 = por %p246_p7, %p43_p0 }
  0x15   : > { %p2129_p12 = por %p252_p8, %p49_p3  ;;  %s2134_s24 = sand.u32 1, %s2008_s13  }
  0x16   : > { %s2574_s22 = scalar_select %p2125_p11, 1, 0 }
  0x17   : > { %s2575_s23 = scalar_select %p2129_p12, 1, 0 }
  0x18   : > { %s2564_s25 = sshll.u32 %s2012_s14, 11  ;;  %s2563_s26 = sshll.u32 %s2134_s24, 7 }
  0x19   : > { %s2576_s0 = sld [smem:[#allocation14_spill]]  ;;  %s297_s30 = scalar_lea.vmem [#allocation3], %s2563_s26 }
  0x1a   : > { %s304_s10 = sshll.u32 %s297_s30, 4  ;;  %p2149_p13 = pnand %p1827_p10, %p2114_p5  ;;  %s2153_s10 = int_to_ptr.vmem [resolvable:$true] %s304_s10 }
  0x1b   : > { %s294_s17 = scalar_lea.sflag [#allocation4], %s2134_s24 }
  0x1c   : > { %p1884_p1 = pneg %p2149_p13 }
  0x1f   : > { %s2143_s29 = scalar_lea.hbm %s2576_s0, %s2564_s25  ;;  %s1887_s20 = scalar_lea.hbm %s2576_s0, 4096 }
  0x20   : > { %s1882_s18 = scalar_lea.hbm %s2143_s29, 2048  ;;  %p1888_p4 = scmp.lt.u32.totalorder %s2143_s29, %s2576_s0 }
  0x21   : > { %p1883_p0 = scmp.ne.s32.totalorder %s2143_s29, %s1882_s18  ;;  %p1889_p5 = scmp.lt.u32.totalorder %s1887_s20, %s1882_s18 }
  0x22   : > { %p1891_p8 = scmp.lt.u32.totalorder %s1882_s18, %s2143_s29 }
  0x23   : > { %p1885_p2 = pnand %p1884_p1, %p1883_p0  ;;  %p1890_p7 = por %p1889_p5, %p1888_p4 }
  0x25   : > { %p1886_p3 = pneg %p1885_p2  ;;  %p1892_p10 = por %p1891_p8, %p1890_p7 }
  0x27   : > { %p1893_p9 = pnand %p1892_p10, %p1886_p3 }
  0x29   : > { %1896 = shalt.err (!%p1893_p9)
}
  0x2a   : > { %s1897_s25 = scalar_lea.vmem %s2153_s10, 2048  ;;  %s2014_s27 = smov [#allocation3]  }
  0x2b   : > { %p1898_p0 = scmp.ne.s32.totalorder %s2153_s10, %s1897_s25  ;;  %s1902_s28 = sshll.u32 %s2014_s27, 4  ;;  %s1903_s28 = int_to_ptr.vmem [resolvable:$false] %s1902_s28 }
  0x2c   : > { %s1904_s26 = scalar_lea.vmem %s1903_s28, 4096  ;;  %p1905_p11 = scmp.lt.s32.totalorder %s2153_s10, %s1903_s28 }
  0x2d   : > { %p1900_p2 = pnand %p1898_p0, %p1884_p1  ;;  %p1906_p4 = scmp.lt.s32.totalorder %s1904_s26, %s1897_s25 }
  0x2f   : > { %p1901_p12 = pneg %p1900_p2  ;;  %p1907_p5 = por %p1906_p4, %p1905_p11 }
  0x31   : > { %p1908_p7 = pnand %p1907_p5, %p1901_p12 }
  0x33   : > { %1911 = shalt.err (!%p1908_p7)
}
  0x34   : > { %s2567_s18 = smov 128   ;;  %s2016_s20 = smov 8  }
  0x35   : > { %1819 = dma.hbm_to_vmem [thread:$0]  (!%p2149_p13), %s2143_s29, 2048, %s2153_s10, %s294_s17, %s2567_s18, %s2567_s18, %s2016_s20  }
  0x36   : > { %p1483_p9 = scmp.ge.s32.totalorder %s2012_s14, 1  ;;  %p333_p11 = scmp.lt.s32.totalorder %s2012_s14, 3 }
  0x37   : > { %s2579_s30 = sshll.u32 %s2012_s14, 11  ;;  %s2580_s0 = sshll.u32 %s2134_s24, 7 }
  0x38   : > { %p2188_p12 = pnand %p1483_p9, %p333_p11  ;;  %s2197_s26 = scalar_lea.hbm %s2554_s1, %s2579_s30 }
  0x39   : > { %s318_s19 = scalar_lea.vmem [#allocation6], %s2580_s0  ;;  %s315_s29 = scalar_lea.sflag [#allocation7], %s2134_s24 }
  0x3a   : > { %s325_s13 = sshll.u32 %s318_s19, 4  ;;  %s1912_s10 = scalar_lea.hbm %s2197_s26, 2048  ;;  %s2201_s13 = int_to_ptr.vmem [resolvable:$true] %s325_s13 }
  0x3b   : > { %p1913_p3 = scmp.ne.s32.totalorder %s2197_s26, %s1912_s10  ;;  %s1917_s30 = scalar_lea.hbm %s2554_s1, 4096 }
  0x3c   : > { %p1918_p0 = scmp.lt.u32.totalorder %s2197_s26, %s2554_s1  ;;  %p1919_p2 = scmp.lt.u32.totalorder %s1917_s30, %s1912_s10 }
  0x3d   : > { %p1915_p8 = pnand %p1913_p3, %p1884_p1  ;;  %p1921_p5 = scmp.lt.u32.totalorder %s1912_s10, %s2197_s26 }
  0x3e   : > { %p1920_p4 = por %p1919_p2, %p1918_p0 }
  0x3f   : > { %p1916_p10 = pneg %p1915_p8 }
  0x40   : > { %p1922_p7 = por %p1921_p5, %p1920_p4 }
  0x42   : > { %p1923_p9 = pnand %p1922_p7, %p1916_p10 }
  0x44   : > { %1926 = shalt.err (!%p1923_p9)
}
  0x45   : > { %s1927_s0 = scalar_lea.vmem %s2201_s13, 2048  ;;  %s2017_s19 = smov [#allocation6]  }
  0x46   : > { %p1928_p11 = scmp.ne.s32.totalorder %s2201_s13, %s1927_s0  ;;  %s1932_s17 = sshll.u32 %s2017_s19, 4  ;;  %s1933_s17 = int_to_ptr.vmem [resolvable:$false] %s1932_s17 }
  0x47   : > { %s1934_s18 = scalar_lea.vmem %s1933_s17, 4096  ;;  %p1935_p6 = scmp.lt.s32.totalorder %s2201_s13, %s1933_s17 }
  0x48   : > { %p1930_p3 = pnand %p1928_p11, %p1884_p1  ;;  %p1936_p0 = scmp.lt.s32.totalorder %s1934_s18, %s1927_s0 }
  0x4a   : > { %p1931_p8 = pneg %p1930_p3  ;;  %p1937_p2 = por %p1936_p0, %p1935_p6 }
  0x4c   : > { %p1938_p4 = pnand %p1937_p2, %p1931_p8 }
  0x4e   : > { %1941 = shalt.err (!%p1938_p4)
}
  0x4f   : > { %s2581_s10 = smov 128   ;;  %337 = sbr.rel (%p2188_p12) target bundleno = 911 (0x38f), region = 56 }
  0x50   : > { %1822 = dma.hbm_to_vmem [thread:$0]  (!%p2149_p13), %s2197_s26, 2048, %s2201_s13, %s315_s29, %s2581_s10, %s2581_s10, %s2016_s20  }
  0x51   : > { %s2235_s27 = sand.u32 (!%p2188_p12), 1, %s2004_s12   ;;  %p2582_p6 = scmp.ne.s32.totalorder (!%p2188_p12), %s2573_s21, 0 }
  0x52   : > { %s1484_s30 = sshll.u32 (!%p2188_p12), %s2235_s27, 7  ;;  %s340_s28 = scalar_lea.sflag (!%p2188_p12), [#allocation4], %s2235_s27 }
  0x53   : > { %s2239_s15 = scalar_lea.vmem (!%p2188_p12), [#allocation3], %s1484_s30 }
  0x56   : > { %1987 = dma.done.wait (%p2582_p6), %s340_s28, 2048  }
  0x57   : > { %1989 = vsyncadd (%p2582_p6), %s340_s28, 4294965248  ;;  %s349_s13 = scalar_lea.sflag [#allocation7], %s2235_s27  ;;  %s2246_s24 = scalar_lea.vmem [#allocation6], %s1484_s30 }
  0x58   : > { %1991 = dma.done.wait (%p2582_p6), %s349_s13, 2048  }
  0x59   : > { %1993 = vsyncadd (%p2582_p6), %s349_s13, 4294965248  ;;  %v1866_v0 = vld [vmem:[%s2555_s2] sm:$0xff]   ;;  %v1867_v1 = vld [vmem:[%s2555_s2 + $0x8] sm:$0xff]   ;;  %vm907_vm7 = vcmask 523264   ;;  %s1246_s30 = sld [smem:[#allocation2]]  ;;  %s1537_s28 = sshll.u32 %s2096_s8, 4 }
  0x5a   : > { %1615 = vmatprep.subr.bf16.mxu0 %v1866_v0  ;;  %1647 = vmatprep.subr.bf16.mxu1 %v1866_v0  ;;  %v1868_v2 = vld [vmem:[%s2555_s2 + $0x10] sm:$0xff]   ;;  %v1869_v3 = vld [vmem:[%s2555_s2 + $0x18] sm:$0xff]   ;;  %v394_v4 = vld [vmem:[%s2239_s15] sm:$0xff]  ;;  %s390_s13 = scalar_lea.vmem [#allocation8], %s2235_s27  ;;  %s2509_s25 = scalar_lea.hbm %s2562_s9, %s1537_s28 }
  0x5b   : > { %1616 = vmatpush3.bf16.msra.mxu0 %v1866_v0  ;;  %1648 = vmatpush3.bf16.msra.mxu1 %v1866_v0  ;;  %v395_v5 = vld [vmem:[%s2239_s15 + $0x8] sm:$0xff]  ;;  %v418_v6 = vld [vmem:[%s2246_s24] sm:$0xff]  ;;  %v1872_v12 = vld [vmem:[%s2555_s2 + $0x30] sm:$0xff]   ;;  %s1373_s26 = scalar_lea.sflag [#allocation5], %s2235_s27  ;;  %p2585_p1 = scmp.ne.s32.totalorder %s2574_s22, 0 }
  0x5c   : > { %1617 = vmatprep.subr.bf16.mxu0 %v1867_v1  ;;  %1649 = vmatprep.subr.bf16.mxu1 %v1867_v1  ;;  %v410_v7 = vpack.c.bf16 %v395_v5, %v394_v4  ;;  %v419_v8 = vld [vmem:[%s2246_s24 + $0x8] sm:$0xff]  ;;  %v1870_v10 = vld [vmem:[%s2555_s2 + $0x20] sm:$0xff]   ;;  %v1873_v13 = vld [vmem:[%s2555_s2 + $0x38] sm:$0xff]   ;;  %s2021_s8 = smov [#allocation8]  }
  0x5d   : > { %v434_v9 = vpack.c.bf16 %v419_v8, %v418_v6  ;;  %v1871_v11 = vld [vmem:[%s2555_s2 + $0x28] sm:$0xff]   ;;  %v396_v14 = vld [vmem:[%s2239_s15 + $0x10] sm:$0xff]  ;;  %v397_v15 = vld [vmem:[%s2239_s15 + $0x18] sm:$0xff]  ;;  %s1946_s21 = sshll.u32 %s2021_s8, 4  ;;  %s1947_s21 = int_to_ptr.vmem [resolvable:$false] %s1946_s21 }
  0x5e   : > { %1631 = vmatprep.mubr.bf16.mxu0 %v410_v7  ;;  %v420_v16 = vld [vmem:[%s2246_s24 + $0x10] sm:$0xff]  ;;  %v421_v17 = vld [vmem:[%s2246_s24 + $0x18] sm:$0xff]  ;;  %v398_v18 = vld [vmem:[%s2239_s15 + $0x20] sm:$0xff]  ;;  %v411_v23 = vpack.c.bf16 %v397_v15, %v396_v14  ;;  %s1948_s0 = scalar_lea.vmem %s1947_s21, 32 }
  0x5f   : > { %1618 = vmatpush3.bf16.msra.mxu0 %v1867_v1  ;;  %1650 = vmatpush3.bf16.msra.mxu1 %v1867_v1  ;;  %v399_v19 = vld [vmem:[%s2239_s15 + $0x28] sm:$0xff]  ;;  %v422_v20 = vld [vmem:[%s2246_s24 + $0x20] sm:$0xff]  ;;  %v435_v24 = vpack.c.bf16 %v421_v17, %v420_v16  ;;  %v400_v28 = vld [vmem:[%s2239_s15 + $0x30] sm:$0xff] }
  0x60   : > { %1619 = vmatprep.subr.bf16.mxu0 %v1868_v2  ;;  %1651 = vmatprep.subr.bf16.mxu1 %v1868_v2  ;;  %v423_v21 = vld [vmem:[%s2246_s24 + $0x28] sm:$0xff]  ;;  %v1874_v22 = vld [vmem:[%s2558_s5] sm:$0xff]   ;;  %v412_v25 = vpack.c.bf16 %v399_v19, %v398_v18  ;;  %v401_v29 = vld [vmem:[%s2239_s15 + $0x38] sm:$0xff] }
  0x61   : > { %1663 = vmatprep.mubr.bf16.mxu1 %v434_v9  ;;  %v436_v26 = vpack.c.bf16 %v423_v21, %v422_v20  ;;  %v1875_v27 = vld [vmem:[%s2558_s5 + $0x8] sm:$0xff]   ;;  %v424_v30 = vld [vmem:[%s2246_s24 + $0x30] sm:$0xff]  ;;  %v425_v31 = vld [vmem:[%s2246_s24 + $0x38] sm:$0xff]  ;;  %v413_v37 = vpack.c.bf16 %v401_v29, %v400_v28 }
  0x62   : > { %v402_v32 = vld [vmem:[%s2239_s15 + $0x40] sm:$0xff]  ;;  %v403_v33 = vld [vmem:[%s2239_s15 + $0x48] sm:$0xff]  ;;  %v1876_v36 = vld [vmem:[%s2558_s5 + $0x10] sm:$0xff]   ;;  %v437_v38 = vpack.c.bf16 %v425_v31, %v424_v30 }
  0x63   : > { %1620 = vmatpush3.bf16.msra.mxu0 %v1868_v2  ;;  %1652 = vmatpush3.bf16.msra.mxu1 %v1868_v2  ;;  %v426_v34 = vld [vmem:[%s2246_s24 + $0x40] sm:$0xff]  ;;  %v427_v35 = vld [vmem:[%s2246_s24 + $0x48] sm:$0xff]  ;;  %v414_v39 = vpack.c.bf16 %v403_v33, %v402_v32  ;;  %v404_v41 = vld [vmem:[%s2239_s15 + $0x50] sm:$0xff] }
  0x64   : > { %1621 = vmatprep.subr.bf16.mxu0 %v1869_v3  ;;  %1653 = vmatprep.subr.bf16.mxu1 %v1869_v3  ;;  %v438_v40 = vpack.c.bf16 %v427_v35, %v426_v34  ;;  %v405_v42 = vld [vmem:[%s2239_s15 + $0x58] sm:$0xff]  ;;  %v428_v43 = vld [vmem:[%s2246_s24 + $0x50] sm:$0xff]  ;;  %v406_v45 = vld [vmem:[%s2239_s15 + $0x60] sm:$0xff] }
  0x65   : > { %v429_v44 = vld [vmem:[%s2246_s24 + $0x58] sm:$0xff]  ;;  %v407_v46 = vld [vmem:[%s2239_s15 + $0x68] sm:$0xff]  ;;  %v430_v47 = vld [vmem:[%s2246_s24 + $0x60] sm:$0xff]  ;;  %v415_v49 = vpack.c.bf16 %v405_v42, %v404_v41 }
  0x66   : > { %v431_v48 = vld [vmem:[%s2246_s24 + $0x68] sm:$0xff]  ;;  %v439_v50 = vpack.c.bf16 %v429_v44, %v428_v43  ;;  %v416_v51 = vpack.c.bf16 %v407_v46, %v406_v45  ;;  %v408_v53 = vld [vmem:[%s2239_s15 + $0x70] sm:$0xff]  ;;  %v409_v54 = vld [vmem:[%s2239_s15 + $0x78] sm:$0xff]  ;;  %s1385_s15 = sshll.u32 %s390_s13, 4  ;;  %s2511_s15 = int_to_ptr.vmem [resolvable:$true] %s1385_s15 }
  0x67   : > { %1622 = vmatpush3.bf16.msra.mxu0 %v1869_v3  ;;  %1654 = vmatpush3.bf16.msra.mxu1 %v1869_v3  ;;  %v440_v52 = vpack.c.bf16 %v431_v48, %v430_v47  ;;  %v432_v55 = vld [vmem:[%s2246_s24 + $0x70] sm:$0xff]  ;;  %v433_v56 = vld [vmem:[%s2246_s24 + $0x78] sm:$0xff]  ;;  %v417_v57 = vpack.c.bf16 %v409_v54, %v408_v53  ;;  %v2323_v60 = vld [vmem:[%s2557_s4] sm:$0xff]   ;;  %s1942_s29 = scalar_lea.vmem %s2511_s15, 16  ;;  %p1949_p5 = scmp.lt.s32.totalorder %s2511_s15, %s1947_s21 }
  0x68   : > { %1623 = vmatprep.subr.bf16.mxu0 %v1870_v10  ;;  %1655 = vmatprep.subr.bf16.mxu1 %v1870_v10  ;;  %v441_v58 = vpack.c.bf16 %v433_v56, %v432_v55  ;;  %v1877_v59 = vld [vmem:[%s2558_s5 + $0x18] sm:$0xff]   ;;  %v2329_v61 = vld [vmem:[%s2556_s3] ss:$0 sm:$0xff]  ;;  %p1943_p13 = scmp.ne.s32.totalorder %s2511_s15, %s1942_s29  ;;  %p1950_p7 = scmp.lt.s32.totalorder %s1948_s0, %s1942_s29 }
  0x6a   : > { %p1944_p12 = pnand %p1943_p13, %p2585_p1  ;;  %p1951_p9 = por %p1950_p7, %p1949_p5 }
  0x6b   : > { %1624 = vmatpush3.bf16.msra.mxu0 %v1870_v10  ;;  %1656 = vmatpush3.bf16.msra.mxu1 %v1870_v10 }
  0x6c   : > { %1625 = vmatprep.subr.bf16.mxu0 %v1871_v11  ;;  %1657 = vmatprep.subr.bf16.mxu1 %v1871_v11  ;;  %p1945_p10 = pneg %p1944_p12 }
  0x6e   : > { %p1952_p11 = pnand %p1951_p9, %p1945_p10 }
  0x6f   : > { %1626 = vmatpush3.bf16.msra.mxu0 %v1871_v11  ;;  %1658 = vmatpush3.bf16.msra.mxu1 %v1871_v11 }
  0x70   : > { %1627 = vmatprep.subr.bf16.mxu0 %v1872_v12  ;;  %1659 = vmatprep.subr.bf16.mxu1 %v1872_v12 }
  0x73   : > { %1628 = vmatpush3.bf16.msra.mxu0 %v1872_v12  ;;  %1660 = vmatpush3.bf16.msra.mxu1 %v1872_v12 }
  0x74   : > { %1629 = vmatprep.subr.bf16.mxu0 %v1873_v13  ;;  %1661 = vmatprep.subr.bf16.mxu1 %v1873_v13 }
  0x77   : > { %1630 = vmatpush3.bf16.msra.mxu0 %v1873_v13  ;;  %1662 = vmatpush3.bf16.msra.mxu1 %v1873_v13 }
  0x78   : > { %1679 = vmatprep.subr.bf16.mxu0 %v1874_v22 }
  0x7a   : > { %1632 = vmatmul.mubr.bf16.vlgmr.msra.gmra.mrb[0].mxu0 %v411_v23  ;;  %1664 = vmatmul.mubr.bf16.vlgmr.msra.gmra.mrb[0].mxu1 %v435_v24 }
  0x7b   : > { %1635 = vmatprep.mubr.bf16.mxu0 %v412_v25  ;;  %1667 = vmatprep.mubr.bf16.mxu1 %v436_v26 }
  0x7c   : > { %1680 = vmatpush3.bf16.msra.mxu0 %v1874_v22 }
  0x7d   : > { %1681 = vmatprep.subr.bf16.mxu0 %v1875_v27 }
  0x80   : > { %1682 = vmatpush3.bf16.msra.mxu0 %v1875_v27 }
  0x81   : > { %1683 = vmatprep.subr.bf16.mxu0 %v1876_v36 }
  0x82   : > { %1636 = vmatmul.mubr.bf16.gmra.mrb[4].mxu0 %v413_v37  ;;  %1668 = vmatmul.mubr.bf16.gmra.mrb[4].mxu1 %v437_v38 }
  0x83   : > { %1639 = vmatprep.mubr.bf16.mxu0 %v414_v39  ;;  %1671 = vmatprep.mubr.bf16.mxu1 %v438_v40 }
  0x84   : > { %1684 = vmatpush3.bf16.msra.mxu0 %v1876_v36 }
  0x85   : > { %1685 = vmatprep.subr.bf16.mxu0 %v1877_v59 }
  0x88   : > { %1686 = vmatpush3.bf16.msra.mxu0 %v1877_v59 }
  0x89   : > { %1703 = vmatprep.subr.bf16.mxu0 %v2323_v60 }
  0x8a   : > { %1640 = vmatmul.mubr.bf16.gmra.mrb[8].mxu0 %v415_v49  ;;  %1672 = vmatmul.mubr.bf16.gmra.mrb[8].mxu1 %v439_v50 }
  0x8b   : > { %1643 = vmatprep.mubr.bf16.mxu0 %v416_v51  ;;  %1675 = vmatprep.mubr.bf16.mxu1 %v440_v52 }
  0x92   : > { %1644 = vmatmul.mubr.bf16.gmra.mrb[12].mxu0 %v417_v57  ;;  %1676 = vmatmul.mubr.bf16.gmra.mrb[12].mxu1 %v441_v58 }
 0x14d   : > { %v1633_v62 = vpop.f32.mrb[0].mxu0  ;;  %v1665_v63 = vpop.f32.mrb[0].mxu1 }
 0x14e   : > { %v556_v0 = vadd.f32 %v1633_v62, %v2329_v61  ;;  %v701_v1 = vadd.f32 %v1665_v63, %v2329_v61  ;;  %v547_v2 = vpop.f32.mrb[1].mxu0  ;;  %v692_v3 = vpop.f32.mrb[1].mxu1 }
 0x14f   : > { %v548_v4 = vadd.f32 %v2329_v61, %v547_v2  ;;  %v693_v5 = vadd.f32 %v2329_v61, %v692_v3  ;;  %v1634_v6 = vpop.f32.mrb[2].mxu0  ;;  %v1666_v7 = vpop.f32.mrb[2].mxu1 }
 0x150   : > { %vm612_vm0 = vcmp.gt.f32.partialorder %v556_v0, 0.0  ;;  %v628_v8 = vmul.f32 0.1, %v556_v0  ;;  %vm757_vm1 = vcmp.gt.f32.partialorder %v701_v1, 0.0  ;;  %v773_v9 = vmul.f32 0.1, %v701_v1 }
 0x151   : > { %vm610_vm2 = vcmp.gt.f32.partialorder %v548_v4, 0.0  ;;  %v626_v10 = vmul.f32 0.1, %v548_v4  ;;  %vm755_vm3 = vcmp.gt.f32.partialorder %v693_v5, 0.0  ;;  %v771_v11 = vmul.f32 0.1, %v693_v5 }
 0x152   : > { %v644_v12 = vsel %vm612_vm0, %v556_v0, %v628_v8  ;;  %v789_v13 = vsel %vm757_vm1, %v701_v1, %v773_v9  ;;  %v559_v14 = vadd.f32 %v1634_v6, %v2329_v61  ;;  %v704_v15 = vadd.f32 %v1666_v7, %v2329_v61  ;;  %v550_v16 = vpop.f32.mrb[3].mxu0  ;;  %v695_v17 = vpop.f32.mrb[3].mxu1 }
 0x153   : > { %v805_v18 = vsub.f32 %v644_v12, %v789_v13  ;;  %v2337_v19 = vadd.f32 %v789_v13, %v644_v12  ;;  %v642_v20 = vsel %vm610_vm2, %v548_v4, %v626_v10  ;;  %v787_v21 = vsel %vm755_vm3, %v693_v5, %v771_v11 }
 0x154   : > { %v803_v22 = vsub.f32 %v642_v20, %v787_v21  ;;  %v2339_v23 = vadd.f32 %v787_v21, %v642_v20  ;;  %vm613_vm4 = vcmp.gt.f32.partialorder %v559_v14, 0.0  ;;  %v629_v24 = vmul.f32 0.1, %v559_v14  ;;  %v1879_v21 = vld [vmem:[%s2557_s4 + $0x8] sm:$0xff]  }
 0x155   : > { %vm758_vm5 = vcmp.gt.f32.partialorder %v704_v15, 0.0  ;;  %v774_v25 = vmul.f32 0.1, %v704_v15  ;;  %v551_v26 = vadd.f32 %v2329_v61, %v550_v16  ;;  %v1637_v27 = vpop.f32.mrb[4].mxu0  ;;  %v2342_v28 = vand.u32 2147483647, %v805_v18 }
 0x156   : > { %v645_v29 = vsel %vm613_vm4, %v559_v14, %v629_v24  ;;  %v696_v30 = vadd.f32 %v2329_v61, %v695_v17  ;;  %v572_v31 = vadd.f32 %v1637_v27, %v2329_v61  ;;  %v1669_v32 = vpop.f32.mrb[4].mxu1  ;;  %v563_v33 = vpop.f32.mrb[5].mxu0  ;;  %v2355_v59 = vand.u32 2147483647, %v803_v22 }
 0x157   : > { %v790_v34 = vsel %vm758_vm5, %v704_v15, %v774_v25  ;;  %vm611_vm6 = vcmp.gt.f32.partialorder %v551_v26, 0.0  ;;  %v627_v35 = vmul.f32 0.1, %v551_v26  ;;  %v717_v36 = vadd.f32 %v1669_v32, %v2329_v61  ;;  %v708_v37 = vpop.f32.mrb[5].mxu1  ;;  %v1638_v38 = vpop.f32.mrb[6].mxu0 }
 0x158   : > { %v806_v39 = vsub.f32 %v645_v29, %v790_v34  ;;  %v846_v40 = vadd.f32 %v790_v34, %v645_v29  ;;  %vm756_vm8 = vcmp.gt.f32.partialorder %v696_v30, 0.0  ;;  %v772_v41 = vmul.f32 0.1, %v696_v30  ;;  %v1670_v42 = vpop.f32.mrb[6].mxu1  ;;  %v566_v43 = vpop.f32.mrb[7].mxu0 }
 0x159   : > { %v643_v44 = vsel %vm611_vm6, %v551_v26, %v627_v35  ;;  %vm616_vm9 = vcmp.gt.f32.partialorder %v572_v31, 0.0  ;;  %v632_v45 = vmul.f32 0.1, %v572_v31  ;;  %vm761_vm10 = vcmp.gt.f32.partialorder %v717_v36, 0.0  ;;  %v711_v46 = vpop.f32.mrb[7].mxu1 }
 0x15a   : > { %v2347_v47 = vand.u32 2147483647, %v806_v39  ;;  %v860_v48 = vpack.c.bf16 %v846_v40, %v2337_v19  ;;  %v788_v49 = vsel %vm756_vm8, %v696_v30, %v772_v41  ;;  %v777_v50 = vmul.f32 0.1, %v717_v36 }
 0x15b   : > { %v804_v51 = vsub.f32 %v643_v44, %v788_v49  ;;  %v844_v52 = vadd.f32 %v788_v49, %v643_v44  ;;  %v648_v53 = vsel %vm616_vm9, %v572_v31, %v632_v45  ;;  %v564_v54 = vadd.f32 %v2329_v61, %v563_v33 }
 0x15c   : > { %v836_v55 = vpack.c.bf16 %v2347_v47, %v2342_v28  ;;  %v793_v56 = vsel %vm761_vm10, %v717_v36, %v777_v50  ;;  %v709_v57 = vadd.f32 %v2329_v61, %v708_v37  ;;  %v575_v58 = vadd.f32 %v1638_v38, %v2329_v61  ;;  %v1880_v38 = vld [vmem:[%s2557_s4 + $0x10] sm:$0xff]   ;;  %v2453_v28 = vld [vmem:[%s2559_s6] ss:$0 sm:$0xff] }
 0x15d   : > { %v809_v62 = vsub.f32 %v648_v53, %v793_v56  ;;  %v2357_v63 = vadd.f32 %v793_v56, %v648_v53  ;;  %vm614_vm11 = vcmp.gt.f32.partialorder %v564_v54, 0.0  ;;  %v1641_v0 = vpop.f32.mrb[8].mxu0  ;;  %v1673_v1 = vpop.f32.mrb[8].mxu1  ;;  %v630_v2 = vmul.f32 0.1, %v564_v54 }
 0x15e   : > { %vm759_vm12 = vcmp.gt.f32.partialorder %v709_v57, 0.0  ;;  %v775_v3 = vmul.f32 0.1, %v709_v57  ;;  %vm617_vm13 = vcmp.gt.f32.partialorder %v575_v58, 0.0  ;;  %v2359_v4 = vand.u32 2147483647, %v804_v51 }
 0x15f   : > { %v633_v5 = vmul.f32 0.1, %v575_v58  ;;  %v720_v6 = vadd.f32 %v1670_v42, %v2329_v61  ;;  %v567_v7 = vadd.f32 %v2329_v61, %v566_v43  ;;  %v579_v8 = vpop.f32.mrb[9].mxu0  ;;  %v724_v9 = vpop.f32.mrb[9].mxu1  ;;  %v646_v10 = vsel %vm614_vm11, %v564_v54, %v630_v2 }
 0x160   : > { %v791_v11 = vsel %vm759_vm12, %v709_v57, %v775_v3  ;;  %v712_v12 = vadd.f32 %v2329_v61, %v711_v46  ;;  %v859_v13 = vpack.c.bf16 %v844_v52, %v2339_v23  ;;  %v1642_v14 = vpop.f32.mrb[10].mxu0  ;;  %v1674_v15 = vpop.f32.mrb[10].mxu1  ;;  %v2373_v23 = vand.u32 2147483647, %v809_v62  ;;  %v1881_v57 = vld [vmem:[%s2557_s4 + $0x18] sm:$0xff]  }
 0x161   : > { %v807_v16 = vsub.f32 %v646_v10, %v791_v11  ;;  %v2365_v17 = vadd.f32 %v791_v11, %v646_v10  ;;  %v649_v18 = vsel %vm617_vm13, %v575_v58, %v633_v5  ;;  %vm762_vm14 = vcmp.gt.f32.partialorder %v720_v6, 0.0  ;;  %v582_v19 = vpop.f32.mrb[11].mxu0  ;;  %v2367_v20 = vpop.f32.mrb[11].mxu1 }
 0x162   : > { %v778_v22 = vmul.f32 0.1, %v720_v6  ;;  %vm615_vm15 = vcmp.gt.f32.partialorder %v567_v7, 0.0  ;;  %v631_v24 = vmul.f32 0.1, %v567_v7  ;;  %vm760_vm0 = vcmp.gt.f32.partialorder %v712_v12, 0.0  ;;  %1687 = vmatprep.mubr.msk.bf16.mxu0 %vm907_vm7, %v859_v13 }
 0x163   : > { %v776_v25 = vmul.f32 0.1, %v712_v12  ;;  %1688 = vmatmul.mubr.msk.bf16.vlgmr.msra.gmra.mrb[16].mxu0 %vm907_vm7, %v860_v48  ;;  %v588_v26 = vadd.f32 %v1641_v0, %v2329_v61  ;;  %v733_v27 = vadd.f32 %v1673_v1, %v2329_v61  ;;  %v580_v31 = vadd.f32 %v2329_v61, %v579_v8 }
 0x164   : > { %v794_v29 = vsel %vm762_vm14, %v720_v6, %v778_v22  ;;  %v647_v30 = vsel %vm615_vm15, %v567_v7, %v631_v24  ;;  %1704 = vmatpush3.bf16.msra.mxu0 %v2323_v60  ;;  %v725_v32 = vadd.f32 %v2329_v61, %v724_v9  ;;  %v2386_v43 = vand.u32 2147483647, %v807_v16 }
 0x165   : > { %v810_v33 = vsub.f32 %v649_v18, %v794_v29  ;;  %v2381_v34 = vadd.f32 %v794_v29, %v649_v18  ;;  %v792_v35 = vsel %vm760_vm0, %v712_v12, %v776_v25  ;;  %vm620_vm1 = vcmp.gt.f32.partialorder %v588_v26, 0.0  ;;  %1705 = vmatprep.subr.bf16.mxu0 %v1879_v21  ;;  %v1645_v36 = vpop.f32.mrb[12].mxu0  ;;  %v1677_v37 = vpop.f32.mrb[12].mxu1 }
 0x166   : > { %v808_v39 = vsub.f32 %v647_v30, %v792_v35  ;;  %v848_v40 = vadd.f32 %v792_v35, %v647_v30  ;;  %v636_v41 = vmul.f32 0.1, %v588_v26  ;;  %vm765_vm2 = vcmp.gt.f32.partialorder %v733_v27, 0.0  ;;  %v595_v60 = vpop.f32.mrb[13].mxu0  ;;  %v740_v42 = vpop.f32.mrb[13].mxu1 }
 0x167   : > { %v781_v44 = vmul.f32 0.1, %v733_v27  ;;  %vm618_vm3 = vcmp.gt.f32.partialorder %v580_v31, 0.0  ;;  %vm763_vm4 = vcmp.gt.f32.partialorder %v725_v32, 0.0  ;;  %v2388_v45 = vand.u32 2147483647, %v810_v33 }
 0x168   : > { %v652_v46 = vsel %vm620_vm1, %v588_v26, %v636_v41  ;;  %v634_v48 = vmul.f32 0.1, %v580_v31  ;;  %v779_v49 = vmul.f32 0.1, %v725_v32  ;;  %1706 = vmatpush3.bf16.msra.mxu0 %v1879_v21  ;;  %v591_v51 = vadd.f32 %v1642_v14, %v2329_v61  ;;  %v1646_v54 = vpop.f32.mrb[14].mxu0  ;;  %v1678_v56 = vpop.f32.mrb[14].mxu1 }
 0x169   : > { %v797_v50 = vsel %vm765_vm2, %v733_v27, %v781_v44  ;;  %v736_v52 = vadd.f32 %v1674_v15, %v2329_v61  ;;  %v583_v53 = vadd.f32 %v2329_v61, %v582_v19  ;;  %1707 = vmatprep.subr.bf16.mxu0 %v1880_v38  ;;  %v598_v2 = vpop.f32.mrb[15].mxu0  ;;  %v743_v3 = vpop.f32.mrb[15].mxu1  ;;  %v2403_v8 = vand.u32 2147483647, %v808_v39 }
 0x16a   : > { %v813_v58 = vsub.f32 %v652_v46, %v797_v50  ;;  %v2397_v62 = vadd.f32 %v797_v50, %v652_v46  ;;  %v650_v0 = vsel %vm618_vm3, %v580_v31, %v634_v48  ;;  %v795_v1 = vsel %vm763_vm4, %v725_v32, %v779_v49 }
 0x16b   : > { %v811_v5 = vsub.f32 %v650_v0, %v795_v1  ;;  %v2401_v6 = vadd.f32 %v795_v1, %v650_v0  ;;  %vm621_vm5 = vcmp.gt.f32.partialorder %v591_v51, 0.0  ;;  %v637_v7 = vmul.f32 0.1, %v591_v51 }
 0x16c   : > { %vm766_vm6 = vcmp.gt.f32.partialorder %v736_v52, 0.0  ;;  %v782_v9 = vmul.f32 0.1, %v736_v52  ;;  %vm619_vm8 = vcmp.gt.f32.partialorder %v583_v53, 0.0  ;;  %1708 = vmatpush3.bf16.msra.mxu0 %v1880_v38  ;;  %v2405_v10 = vand.u32 2147483647, %v813_v58 }
 0x16d   : > { %v653_v11 = vsel %vm621_vm5, %v591_v51, %v637_v7  ;;  %v635_v12 = vmul.f32 0.1, %v583_v53  ;;  %v728_v13 = vadd.f32 %v2329_v61, %v2367_v20  ;;  %1709 = vmatprep.subr.bf16.mxu0 %v1881_v57  ;;  %v861_v15 = vpack.c.bf16 %v848_v40, %v2365_v17 }
 0x16e   : > { %v798_v14 = vsel %vm766_vm6, %v736_v52, %v782_v9  ;;  %v862_v16 = vpack.c.bf16 %v2381_v34, %v2357_v63  ;;  %v604_v18 = vadd.f32 %v1645_v36, %v2329_v61  ;;  %v749_v20 = vadd.f32 %v1677_v37, %v2329_v61 }
 0x16f   : > { %v814_v19 = vsub.f32 %v653_v11, %v798_v14  ;;  %v854_v21 = vadd.f32 %v798_v14, %v653_v11  ;;  %v651_v22 = vsel %vm619_vm8, %v583_v53, %v635_v12  ;;  %vm764_vm9 = vcmp.gt.f32.partialorder %v728_v13, 0.0  ;;  %1691 = vmatprep.mubr.msk.bf16.mxu0 %vm907_vm7, %v861_v15 }
 0x170   : > { %v780_v24 = vmul.f32 0.1, %v728_v13  ;;  %vm624_vm10 = vcmp.gt.f32.partialorder %v604_v18, 0.0  ;;  %v640_v25 = vmul.f32 0.1, %v604_v18  ;;  %1710 = vmatpush3.bf16.msra.mxu0 %v1881_v57  ;;  %v596_v63 = vadd.f32 %v2329_v61, %v595_v60 }
 0x171   : > { %v2415_v26 = vand.u32 2147483647, %v811_v5  ;;  %1692 = vmatmul.mubr.msk.bf16.gmra.mrb[20].mxu0 %vm907_vm7, %v862_v16  ;;  %v741_v17 = vadd.f32 %v2329_v61, %v740_v42  ;;  %v607_v27 = vadd.f32 %v1646_v54, %v2329_v61  ;;  %vm769_vm11 = vcmp.gt.f32.partialorder %v749_v20, 0.0 }
 0x172   : > { %v796_v29 = vsel %vm764_vm9, %v728_v13, %v780_v24  ;;  %v656_v30 = vsel %vm624_vm10, %v604_v18, %v640_v25  ;;  %v785_v31 = vmul.f32 0.1, %v749_v20  ;;  %vm622_vm12 = vcmp.gt.f32.partialorder %v596_v63, 0.0 }
 0x173   : > { %v812_v32 = vsub.f32 %v651_v22, %v796_v29  ;;  %v852_v33 = vadd.f32 %v796_v29, %v651_v22  ;;  %v638_v34 = vmul.f32 0.1, %v596_v63  ;;  %v830_v35 = vand.u32 2147483647, %v814_v19 }
 0x174   : > { %v801_v36 = vsel %vm769_vm11, %v749_v20, %v785_v31  ;;  %vm767_vm13 = vcmp.gt.f32.partialorder %v741_v17, 0.0  ;;  %v783_v37 = vmul.f32 0.1, %v741_v17  ;;  %vm625_vm14 = vcmp.gt.f32.partialorder %v607_v27, 0.0 }
 0x175   : > { %v817_v38 = vsub.f32 %v656_v30, %v801_v36  ;;  %v857_v39 = vadd.f32 %v801_v36, %v656_v30  ;;  %v654_v40 = vsel %vm622_vm12, %v596_v63, %v638_v34  ;;  %v641_v60 = vmul.f32 0.1, %v607_v27 }
 0x176   : > { %v799_v41 = vsel %vm767_vm13, %v741_v17, %v783_v37  ;;  %v752_v42 = vadd.f32 %v1678_v56, %v2329_v61  ;;  %v599_v44 = vadd.f32 %v2329_v61, %v598_v2  ;;  %v828_v46 = vand.u32 2147483647, %v812_v32 }
 0x177   : > { %v815_v48 = vsub.f32 %v654_v40, %v799_v41  ;;  %v855_v49 = vadd.f32 %v799_v41, %v654_v40  ;;  %v744_v50 = vadd.f32 %v2329_v61, %v743_v3  ;;  %v657_v51 = vsel %vm625_vm14, %v607_v27, %v641_v60 }
 0x178   : > { %vm770_vm15 = vcmp.gt.f32.partialorder %v752_v42, 0.0  ;;  %v786_v52 = vmul.f32 0.1, %v752_v42  ;;  %vm623_vm0 = vcmp.gt.f32.partialorder %v599_v44, 0.0  ;;  %v833_v53 = vand.u32 2147483647, %v817_v38 }
 0x179   : > { %v639_v54 = vmul.f32 0.1, %v599_v44  ;;  %vm768_vm1 = vcmp.gt.f32.partialorder %v744_v50, 0.0  ;;  %v863_v57 = vpack.c.bf16 %v852_v33, %v2401_v6  ;;  %v784_v0 = vmul.f32 0.1, %v744_v50 }
 0x17a   : > { %v802_v58 = vsel %vm770_vm15, %v752_v42, %v786_v52  ;;  %v864_v56 = vpack.c.bf16 %v854_v21, %v2397_v62  ;;  %v835_v1 = vpack.c.bf16 %v2359_v4, %v2355_v59  ;;  %v837_v61 = vpack.c.bf16 %v2403_v8, %v2386_v43 }
 0x17b   : > { %v818_v2 = vsub.f32 %v657_v51, %v802_v58  ;;  %v858_v5 = vadd.f32 %v802_v58, %v657_v51  ;;  %v655_v7 = vsel %vm623_vm0, %v599_v44, %v639_v54  ;;  %1695 = vmatprep.mubr.msk.bf16.mxu0 %vm907_vm7, %v863_v57  ;;  %v800_v3 = vsel %vm768_vm1, %v744_v50, %v784_v0 }
 0x17c   : > { %1696 = vmatmul.mubr.msk.bf16.gmra.mrb[24].mxu0 %vm907_vm7, %v864_v56  ;;  %v838_v6 = vpack.c.bf16 %v2388_v45, %v2373_v23  ;;  %v839_v9 = vpack.c.bf16 %v828_v46, %v2415_v26  ;;  %v840_v62 = vpack.c.bf16 %v830_v35, %v2405_v10  ;;  %v816_v59 = vsub.f32 %v655_v7, %v800_v3 }
 0x17d   : > { %v834_v11 = vand.u32 2147483647, %v818_v2  ;;  %v856_v4 = vadd.f32 %v800_v3, %v655_v7  ;;  %v866_v12 = vpack.c.bf16 %v858_v5, %v857_v39  ;;  %v831_v13 = vand.u32 2147483647, %v815_v48 }
 0x17e   : > { %v832_v14 = vand.u32 2147483647, %v816_v59  ;;  %v2018_v23 = vmov 0.0|0.0   ;;  %vm2019_vm2 = vmmov 0   ;;  %v2020_v45 = vmov 0.0  }
 0x17f   : > { %v865_v15 = vpack.c.bf16 %v856_v4, %v855_v49  ;;  %v842_v16 = vpack.c.bf16 %v834_v11, %v833_v53  ;;  %1762 = vmatprep.subr.bf16.mxu1 %v2018_v23  ;;  %1759 = vmatprep.mubr.msk.f32.mxu1 %vm2019_vm2, %v2020_v45  ;;  %vm1248_vm5 = vcmask 261120  }
 0x180   : > { %v841_v43 = vpack.c.bf16 %v832_v14, %v831_v13  ;;  %vm2461_vm8 = vmpackc.low %vm1248_vm5, %vm1248_vm5 }
 0x181   : > { %1699 = vmatprep.mubr.msk.bf16.mxu0 %vm907_vm7, %v865_v15 }
 0x184   : > { %1700 = vmatmul.mubr.msk.bf16.gmra.mrb[28].mxu0 %vm907_vm7, %v866_v12 }
 0x185   : > { %1711 = vmatprep.mubr.msk.bf16.mxu0 %vm907_vm7, %v835_v1 }
 0x18c   : > { %1712 = vmatmul.mubr.msk.bf16.vlgmr.msra.gmra.mrb[16].mxu0 %vm907_vm7, %v836_v55 }
 0x18d   : > { %1715 = vmatprep.mubr.msk.bf16.mxu0 %vm907_vm7, %v837_v61 }
 0x194   : > { %1716 = vmatmul.mubr.msk.bf16.gmra.mrb[20].mxu0 %vm907_vm7, %v838_v6 }
 0x195   : > { %1719 = vmatprep.mubr.msk.bf16.mxu0 %vm907_vm7, %v839_v9 }
 0x19c   : > { %1720 = vmatmul.mubr.msk.bf16.gmra.mrb[24].mxu0 %vm907_vm7, %v840_v62 }
 0x19d   : > { %1723 = vmatprep.mubr.msk.bf16.mxu0 %vm907_vm7, %v841_v43 }
 0x1a4   : > { %1724 = vmatmul.mubr.msk.bf16.gmra.mrb[28].mxu0 %vm907_vm7, %v842_v16 }
 0x25f   : > { %v1713_v47 = vpop.f32.mrb[16].mxu0 }
 0x260   : > { %v1183_v55 = vadd.f32 %v1713_v47, %v2453_v28  ;;  %v1111_v8 = vpop.f32.mrb[17].mxu0 }
 0x261   : > { %v1181_v10 = vadd.f32 %v2453_v28, %v1111_v8  ;;  %v1714_v18 = vpop.f32.mrb[18].mxu0 }
 0x262   : > { %v1215_v19 = vmul.f32 0.1, %v1183_v55  ;;  %v1184_v21 = vadd.f32 %v1714_v18, %v2453_v28  ;;  %v1114_v22 = vpop.f32.mrb[19].mxu0  ;;  %vm1199_vm7 = vcmp.gt.f32.partialorder %v1183_v55, 0.0 }
 0x263   : > { %v1213_v24 = vmul.f32 0.1, %v1181_v10  ;;  %v1182_v25 = vadd.f32 %v2453_v28, %v1114_v22  ;;  %vm1197_vm3 = vcmp.gt.f32.partialorder %v1181_v10, 0.0 }
 0x264   : > { %vm1200_vm4 = vcmp.gt.f32.partialorder %v1184_v21, 0.0  ;;  %v1216_v20 = vmul.f32 0.1, %v1184_v21  ;;  %v1231_v63 = vsel %vm1199_vm7, %v1183_v55, %v1215_v19 }
 0x265   : > { %vm1198_vm6 = vcmp.gt.f32.partialorder %v1182_v25, 0.0  ;;  %v1214_v26 = vmul.f32 0.1, %v1182_v25  ;;  %v1229_v27 = vsel %vm1197_vm3, %v1181_v10, %v1213_v24 }
 0x266   : > { %v1232_v17 = vsel %vm1200_vm4, %v1184_v21, %v1216_v20 }
 0x267   : > { %v1767_v29 = vpack.c.bf16 %v1232_v17, %v1231_v63  ;;  %v1230_v30 = vsel %vm1198_vm6, %v1182_v25, %v1214_v26  ;;  %v1717_v31 = vpop.f32.mrb[20].mxu0  ;;  %v1247_v26 = vstv %s1246_s30 }
 0x268   : > { %v1763_v33 = vpack.c.bf16 %v1230_v30, %v1229_v27  ;;  %v1187_v34 = vadd.f32 %v1717_v31, %v2453_v28  ;;  %v1127_v35 = vpop.f32.mrb[21].mxu0 }
 0x269   : > { %v1185_v36 = vadd.f32 %v2453_v28, %v1127_v35  ;;  %v1718_v37 = vpop.f32.mrb[22].mxu0 }
 0x26a   : > { %v1219_v38 = vmul.f32 0.1, %v1187_v34  ;;  %v1188_v39 = vadd.f32 %v1718_v37, %v2453_v28  ;;  %v1130_v40 = vpop.f32.mrb[23].mxu0  ;;  %1765 = vmatpush3.bf16.xpose.msk.msra.mxu1 %vm2461_vm8, %v1763_v33  ;;  %vm1203_vm9 = vcmp.gt.f32.partialorder %v1187_v34, 0.0 }
 0x26b   : > { %v1217_v41 = vmul.f32 0.1, %v1185_v36  ;;  %v1186_v60 = vadd.f32 %v2453_v28, %v1130_v40  ;;  %1766 = vmatprep.subr.bf16.mxu1 %v2018_v23  ;;  %vm1201_vm10 = vcmp.gt.f32.partialorder %v1185_v36, 0.0 }
 0x26c   : > { %vm1204_vm11 = vcmp.gt.f32.partialorder %v1188_v39, 0.0  ;;  %v1220_v42 = vmul.f32 0.1, %v1188_v39  ;;  %v1235_v46 = vsel %vm1203_vm9, %v1187_v34, %v1219_v38 }
 0x26d   : > { %vm1202_vm12 = vcmp.gt.f32.partialorder %v1186_v60, 0.0  ;;  %v1218_v44 = vmul.f32 0.1, %v1186_v60  ;;  %v1233_v49 = vsel %vm1201_vm10, %v1185_v36, %v1217_v41 }
 0x26e   : > { %v1236_v48 = vsel %vm1204_vm11, %v1188_v39, %v1220_v42 }
 0x26f   : > { %v1775_v50 = vpack.c.bf16 %v1236_v48, %v1235_v46  ;;  %v1234_v51 = vsel %vm1202_vm12, %v1186_v60, %v1218_v44  ;;  %v1721_v52 = vpop.f32.mrb[24].mxu0 }
 0x270   : > { %v1771_v53 = vpack.c.bf16 %v1234_v51, %v1233_v49  ;;  %v1191_v54 = vadd.f32 %v1721_v52, %v2453_v28  ;;  %v1143_v57 = vpop.f32.mrb[25].mxu0 }
 0x271   : > { %v1189_v58 = vadd.f32 %v2453_v28, %v1143_v57  ;;  %v1722_v0 = vpop.f32.mrb[26].mxu0 }
 0x272   : > { %v1223_v56 = vmul.f32 0.1, %v1191_v54  ;;  %v1192_v1 = vadd.f32 %v1722_v0, %v2453_v28  ;;  %v1146_v2 = vpop.f32.mrb[27].mxu0  ;;  %1769 = vmatpush3.bf16.xpose.msk.msra.mxu1 %vm2461_vm8, %v1767_v29  ;;  %vm1207_vm13 = vcmp.gt.f32.partialorder %v1191_v54, 0.0 }
 0x273   : > { %v1221_v5 = vmul.f32 0.1, %v1189_v58  ;;  %v1190_v7 = vadd.f32 %v2453_v28, %v1146_v2  ;;  %1770 = vmatprep.subr.bf16.mxu1 %v2018_v23  ;;  %vm1205_vm14 = vcmp.gt.f32.partialorder %v1189_v58, 0.0 }
 0x274   : > { %vm1208_vm15 = vcmp.gt.f32.partialorder %v1192_v1, 0.0  ;;  %v1224_v61 = vmul.f32 0.1, %v1192_v1  ;;  %v1239_v6 = vsel %vm1207_vm13, %v1191_v54, %v1223_v56 }
 0x275   : > { %vm1206_vm0 = vcmp.gt.f32.partialorder %v1190_v7, 0.0  ;;  %v1222_v3 = vmul.f32 0.1, %v1190_v7  ;;  %v1237_v62 = vsel %vm1205_vm14, %v1189_v58, %v1221_v5 }
 0x276   : > { %v1240_v9 = vsel %vm1208_vm15, %v1192_v1, %v1224_v61 }
 0x277   : > { %v1783_v11 = vpack.c.bf16 %v1240_v9, %v1239_v6  ;;  %v1238_v59 = vsel %vm1206_vm0, %v1190_v7, %v1222_v3  ;;  %v1725_v4 = vpop.f32.mrb[28].mxu0 }
 0x278   : > { %v1779_v12 = vpack.c.bf16 %v1238_v59, %v1237_v62  ;;  %v1195_v13 = vadd.f32 %v1725_v4, %v2453_v28  ;;  %v1159_v14 = vpop.f32.mrb[29].mxu0 }
 0x279   : > { %v1193_v15 = vadd.f32 %v2453_v28, %v1159_v14  ;;  %v1726_v16 = vpop.f32.mrb[30].mxu0 }
 0x27a   : > { %v1227_v43 = vmul.f32 0.1, %v1195_v13  ;;  %v1196_v45 = vadd.f32 %v1726_v16, %v2453_v28  ;;  %v1162_v47 = vpop.f32.mrb[31].mxu0  ;;  %1773 = vmatpush3.bf16.xpose.msk.msra.mxu1 %vm2461_vm8, %v1771_v53  ;;  %vm1211_vm1 = vcmp.gt.f32.partialorder %v1195_v13, 0.0 }
 0x27b   : > { %v1225_v55 = vmul.f32 0.1, %v1193_v15  ;;  %v1194_v8 = vadd.f32 %v2453_v28, %v1162_v47  ;;  %1774 = vmatprep.subr.bf16.mxu1 %v2018_v23  ;;  %vm1209_vm2 = vcmp.gt.f32.partialorder %v1193_v15, 0.0  ;;  %v1245_v28 = vld [vmem:[%s2560_s7] sm:$0x1] }
 0x27c   : > { %vm1212_vm7 = vcmp.gt.f32.partialorder %v1196_v45, 0.0  ;;  %v1228_v10 = vmul.f32 0.1, %v1196_v45  ;;  %v1243_v19 = vsel %vm1211_vm1, %v1195_v13, %v1227_v43 }
 0x27d   : > { %vm1210_vm3 = vcmp.gt.f32.partialorder %v1194_v8, 0.0  ;;  %v1226_v18 = vmul.f32 0.1, %v1194_v8  ;;  %v1241_v22 = vsel %vm1209_vm2, %v1193_v15, %v1225_v55 }
 0x27e   : > { %v1244_v21 = vsel %vm1212_vm7, %v1196_v45, %v1228_v10 }
 0x27f   : > { %v1791_v24 = vpack.c.bf16 %v1244_v21, %v1243_v19  ;;  %v1242_v25 = vsel %vm1210_vm3, %v1194_v8, %v1226_v18 }
 0x280   : > { %v1787_v20 = vpack.c.bf16 %v1242_v25, %v1241_v22 }
 0x282   : > { %1777 = vmatpush3.bf16.xpose.msk.msra.mxu1 %vm2461_vm8, %v1775_v50 }
 0x283   : > { %1778 = vmatprep.subr.bf16.mxu1 %v2018_v23 }
 0x28a   : > { %1781 = vmatpush3.bf16.xpose.msk.msra.mxu1 %vm2461_vm8, %v1779_v12 }
 0x28b   : > { %1782 = vmatprep.subr.bf16.mxu1 %v2018_v23 }
 0x292   : > { %1785 = vmatpush3.bf16.xpose.msk.msra.mxu1 %vm2461_vm8, %v1783_v11 }
 0x293   : > { %1786 = vmatprep.subr.bf16.mxu1 %v2018_v23 }
 0x29a   : > { %1789 = vmatpush3.bf16.xpose.msk.msra.mxu1 %vm2461_vm8, %v1787_v20 }
 0x29b   : > { %1790 = vmatprep.subr.bf16.mxu1 %v2018_v23 }
 0x2a2   : > { %1793 = vmatpush3.bf16.xpose.msk.msra.mxu1 %vm2461_vm8, %v1791_v24 }
 0x2a9   : > { %1760 = vmatmul.mubr.msk.f32.vlgmr.msra.gmra.mrb[16].mxu1 %vm1248_vm5, %v1245_v28 }
 0x37c   : > { %v1366_v63 = vpop.f32.mrb[16].mxu1 }
 0x37d   : > { %v1367_v17 = vadd.f32 %v1366_v63, %v1247_v26  ;;  %v1761_v27 = vpop.f32.mrb[17].mxu1 }
 0x37f   : > { %v1370_v23 = vmax.f32 %v1367_v17, 0.0 }
 0x381   : > { %1371 = vst [vmem:[%s390_s13] sm:$0x1] %v1370_v23 }
 0x382   : > { %1955 = shalt.err (!%p1952_p11)
}
 0x383   : > { %s1956_s27 = scalar_lea.hbm %s2509_s25, 16  ;;  %s1960_s18 = scalar_lea.hbm %s2562_s9, 32 }
 0x384   : > { %p1957_p3 = scmp.ne.s32.totalorder %s2509_s25, %s1956_s27  ;;  %p1961_p2 = scmp.lt.u32.totalorder %s2509_s25, %s2562_s9 }
 0x385   : > { %p1962_p4 = scmp.lt.u32.totalorder %s1960_s18, %s1956_s27  ;;  %p1964_p13 = scmp.lt.u32.totalorder %s1956_s27, %s2509_s25 }
 0x386   : > { %p1958_p8 = pnand %p1957_p3, %p2585_p1 }
 0x387   : > { %p1963_p6 = por %p1962_p4, %p1961_p2 }
 0x388   : > { %p1959_p0 = pneg %p1958_p8 }
 0x389   : > { %p1965_p12 = por %p1964_p13, %p1963_p6 }
 0x38b   : > { %p1966_p10 = pnand %p1965_p12, %p1959_p0 }
 0x38d   : > { %1969 = shalt.err (!%p1966_p10)
}
 0x38e   : > { %1814 = dma.vmem_to_hbm [thread:$0]  (%p2585_p1), %s2511_s15, 16, %s2509_s25, %s1373_s26  }
 0x38f PF: > { %s1397_s28 = sand.u32 1, %s2000_s11   ;;  %p2586_p5 = scmp.ne.s32.totalorder %s2575_s23, 0 }
 0x390   : > { %p2587_p7 = scmp.ge.s32.totalorder %s2012_s14, 2  ;;  %s1398_s13 = scalar_lea.sflag [#allocation5], %s1397_s28 }
 0x392   : > { %p1824_p9 = pnand %p2587_p7, %p2586_p5 }
 0x394   : > { %1995 = dma.done.wait (!%p1824_p9), %s1398_s13, 16  }
 0x395   : > { %1997 = vsyncadd (!%p1824_p9), %s1398_s13, 4294967280  ;;  %s2588_s20 = sld [smem:[#allocation12_spill]]  ;;  %s2589_s13 = sld [smem:[#allocation13_spill]] }
 0x396   : > { %p26_p11 = scmp.ge.s32.totalorder %s2100_s16, 4   ;;  %s2590_s11 = smov %s2004_s12 }
 0x397   : > { %s2592_s14 = smov %s2100_s16 }
 0x398   :  { %28 = sbr.rel (!%p26_p11) target bundleno = 10 (0xa), region = 114 }
 0x39b   : > { %s2591_s12 = smov %s2588_s20 }
 0x39f   :  { %1402 = vsyncpa [#allocation4], 1 }
 0x3a0   :  { %1404 = vsyncpa [#allocation4 + $0x1], 1 }
 0x3a1   :  { %1405 = vsyncpa [#allocation7], 1 }
 0x3a2   :  { %1407 = vsyncpa [#allocation7 + $0x1], 1 }
 0x3a3   :  { %1408 = vsyncpa [#allocation5], 1 }
 0x3a4   :  { %1410 = vsyncpa [#allocation5 + $0x1], 1 }

</bundles_post_ra>
